<compile_context>
chip_gen: v7x
topology: tpu7x:2x2x1
jax: 0.10.0
libtpu: 0.0.40
codegen_flags: <defaults>
</compile_context>

<pallas_src>
import jax
import jax.numpy as jnp
from jax.experimental import pallas as pl
from jax.experimental.pallas import tpu as pltpu

# ---- small, module-consistent sizes ------------------------------------
B = 2                  # batch
C = 4                  # image channels
HW = 16                # spatial size (v_org is B x C x HW x HW)
S = HW * HW            # flattened spatial positions per channel
NUM_VERBS = 10
MAX_ROLE_COUNT = 6     # encoder.max_role_count
HIDDEN = 32            # hidden rep dim produced by each of caq / cai
HIDDEN2 = 2 * HIDDEN   # stacked [caq | cai] hidden axis
H2P = 128              # hidden axis zero-padded to a full lane width
RP = 8                 # roles padded to a sublane multiple
NUM_LABELS = 128       # classifier output dim (lane-aligned)

_HI = jax.lax.Precision.HIGHEST   # high-precision matmuls for the pure-JAX ref


# --------------- Pallas kernel: whole forward in one launch --------------
def _fused_forward_kernel(pooled_ref, wimg_ref, verb_ref, role_ref,
                          wcls_ref, bias_ref, out_ref):
    """Top_Down_Baseline forward, one launch.

    pooled_ref : SMEM (B, C)     f32   spatially mean-pooled image features
    wimg_ref   : VMEM (C, H2P)   f32   [caq | cai] image projection weight
    verb_ref   : VMEM (B, H2P)   f32   gathered [caq | cai] verb embeddings
    role_ref   : VMEM (RP, H2P)  f32   [caq | cai] role embeddings (padded)
    wcls_ref   : VMEM (H2P, L)   bf16  [[W],[W]]-stacked classifier weight
    bias_ref   : VMEM (1, L)     f32   classifier bias
    out_ref    : VMEM (B*RP, L)  f32   per-(batch, padded-role) logits
    """
    bsz = pooled_ref.shape[0]
    n_ch = pooled_ref.shape[1]
    rp = role_ref.shape[0]

    wimg = wimg_ref[...]                       # (C, H2P)  f32
    role = role_ref[...]                       # (RP, H2P) f32
    wcls = wcls_ref[...]                       # (H2P, L)  bf16
    bias = bias_ref[...]                       # (1, L)    f32

    for b in range(bsz):                       # static unroll: bsz == 2
        # Stage 1: image projection for BOTH sub-models, once per image row
        # (deduplicated across roles).  K = C = 4, so scalar-splat MACs on the
        # VPU beat a padded MXU dot.
        proj_b = pooled_ref[b, 0] * wimg[0:1, :]
        for c in range(1, n_ch):
            proj_b = proj_b + pooled_ref[b, c] * wimg[c:c + 1, :]   # (1, H2P)

        # Stage 2: + verb embedding, ReLU; broadcast over the roles (sublane
        # broadcast), + role embedding, ReLU -> [caq_rep | cai_rep].
        feat_b = jnp.maximum(proj_b + verb_ref[b:b + 1, :], 0.0)    # (1, H2P)
        rep_b = jnp.maximum(feat_b + role, 0.0)                     # (RP, H2P)

        # Stage 3: classifier.  [caq|cai] @ [[W],[W]] + b == (caq+cai) @ W + b,
        # so the caq+cai add is absorbed into this bf16 MXU dot (f32 acc).
        # Stores land on aligned (8,128) tiles (b*rp in {0, 8}), unmasked.
        out_ref[b * rp:(b + 1) * rp, :] = (
            jnp.dot(rep_b.astype(jnp.bfloat16), wcls,
                    preferred_element_type=jnp.float32) + bias)


# ------------- deterministic synthetic sub-models (parameters) -----------
def init_submodel(key):
    k1, k2, k3 = jax.random.split(key, 3)
    return {
        "w_img": 0.1 * jax.random.normal(k1, (C, HIDDEN), jnp.float32),
        "verb_emb": 0.1 * jax.random.normal(k2, (NUM_VERBS, HIDDEN), jnp.float32),
        "role_emb": 0.1 * jax.random.normal(k3, (MAX_ROLE_COUNT, HIDDEN), jnp.float32),
    }


def init_params(key):
    kcaq, kcai, kw, kb = jax.random.split(key, 4)
    return {
        "caq": init_submodel(kcaq),
        "cai": init_submodel(kcai),
        "cls_w": 0.05 * jax.random.normal(kw, (HIDDEN, NUM_LABELS), jnp.float32),
        "cls_b": 0.05 * jax.random.normal(kb, (1, NUM_LABELS), jnp.float32),
    }


def prepare_fused_params(params):
    """One-time parameter preprocessing (outside the hot path).

    * caq / cai stacked along the hidden axis -> one pass computes both reps.
    * classifier weight stacked vertically ([[W],[W]]) so the caq+cai add is
      absorbed into the classifier dot (exact: both sub-models share W).
    * hidden axis zero-padded 2H=64 -> 128 (lane-dense; exact through the
      ReLUs because the padded classifier rows are zero).
    * roles padded 6 -> 8 so every tile is a full (8,128) block.
    * classifier weight stored bf16 (MXU-native operand); everything touched
      by VPU adds/ReLUs stays f32 (v5e has no bf16 VPU).
    """
    h2 = 2 * HIDDEN
    pad_h = H2P - h2

    w_img = jnp.concatenate([params["caq"]["w_img"],
                             params["cai"]["w_img"]], axis=1)            # (C, 2H)
    verb = jnp.concatenate([params["caq"]["verb_emb"],
                            params["cai"]["verb_emb"]], axis=1)          # (V, 2H)
    role = jnp.concatenate([params["caq"]["role_emb"],
                            params["cai"]["role_emb"]], axis=1)          # (R, 2H)
    w_cls = jnp.concatenate([params["cls_w"], params["cls_w"]], axis=0)  # (2H, L)

    return {
        "w_img": jnp.pad(w_img, ((0, 0), (0, pad_h))),                        # (C, H2P) f32
        "verb_emb": jnp.pad(verb, ((0, 0), (0, pad_h))),                      # (V, H2P) f32
        "role_emb": jnp.pad(role, ((0, RP - MAX_ROLE_COUNT), (0, pad_h))),    # (RP, H2P) f32
        "w_cls": jnp.pad(w_cls, ((0, pad_h), (0, 0))).astype(jnp.bfloat16),   # (H2P, L) bf16
        "b_cls": params["cls_b"],                                             # (1, L) f32
    }


# ----------------------- Top_Down_Baseline.forward ----------------------
def top_down_baseline_forward(fused, v_org, gt_verb):
    b = v_org.shape[0]

    # Wrapper-side work is O(B*C) / O(B*H) only: the spatial mean shrinks the
    # image to (B, C) = 32 B before anything is DMA'd to the kernel, and the
    # verb-embedding gather is (B, H2P).  No repeat / tile / pad temporaries.
    pooled = jnp.mean(v_org, axis=(2, 3))                    # (B, C) f32
    verb_rows = fused["verb_emb"][gt_verb]                   # (B, H2P) f32

    vmem = pl.BlockSpec(memory_space=pltpu.MemorySpace.VMEM)
    smem = pl.BlockSpec(memory_space=pltpu.MemorySpace.SMEM)

    cost = pl.CostEstimate(
        flops=2 * b * RP * H2P * NUM_LABELS + 2 * b * C * H2P,
        transcendentals=0,
        bytes_accessed=(pooled.size * 4 + fused["w_img"].size * 4
                        + verb_rows.size * 4 + fused["role_emb"].size * 4
                        + fused["w_cls"].size * 2 + fused["b_cls"].size * 4
                        + b * RP * NUM_LABELS * 4),
    )

    logits = pl.pallas_call(
        _fused_forward_kernel,
        out_shape=jax.ShapeDtypeStruct((b * RP, NUM_LABELS), jnp.float32),
        in_specs=[smem, vmem, vmem, vmem, vmem, vmem],
        out_specs=vmem,
        cost_estimate=cost,
    )(pooled, fused["w_img"], verb_rows, fused["role_emb"],
      fused["w_cls"], fused["b_cls"])

    # logits.view(batch, max_role_count, -1); padded role rows sliced off so
    # nothing downstream ever sees them.
    return logits.reshape(b, RP, NUM_LABELS)[:, :MAX_ROLE_COUNT, :]


# -------------------- pure-JAX reference (module-faithful) ---------------
def _hiddenrep_ref(p, v_org, gt_verb):
    pooled = jnp.mean(v_org, axis=(2, 3))                                    # (B, C)
    feat = jax.nn.relu(jnp.matmul(pooled, p["w_img"], precision=_HI)
                       + p["verb_emb"][gt_verb])                             # (B, H)
    rep = jax.nn.relu(feat[:, None, :] + p["role_emb"][None, :, :])          # (B, R, H)
    return rep.reshape(v_org.shape[0] * MAX_ROLE_COUNT, HIDDEN)


def reference_forward(params, v_org, gt_verb):
    caq = _hiddenrep_ref(params["caq"], v_org, gt_verb)
    cai = _hiddenrep_ref(params["cai"], v_org, gt_verb)
    logits = jnp.matmul(caq + cai, params["cls_w"], precision=_HI) + params["cls_b"]
    return logits.reshape(v_org.shape[0], MAX_ROLE_COUNT, NUM_LABELS)


if __name__ == "__main__":
    key = jax.random.PRNGKey(0)
    kp, kv, kverb = jax.random.split(key, 3)

    params = init_params(kp)
    v_org = jax.random.normal(kv, (B, C, HW, HW), jnp.float32)
    gt_verb = jax.random.randint(kverb, (B,), 0, NUM_VERBS, jnp.int32)

    fused = prepare_fused_params(params)
    fwd = jax.jit(top_down_baseline_forward)
    role_label_pred = jax.block_until_ready(fwd(fused, v_org, gt_verb))

    ref = reference_forward(params, v_org, gt_verb)

    assert role_label_pred.shape == (B, MAX_ROLE_COUNT, NUM_LABELS)
    # Tolerance budget covers the bf16-operand MXU classifier path (f32 acc);
    # structural bugs show up as O(1e-1).
    assert jnp.allclose(role_label_pred, ref, atol=2e-3, rtol=2e-3)
    print("KERNEL_OK")
</pallas_src>

<mosaic_0001>
module attributes {stable_mosaic.version = 11 : i64} {
  func.func @_fused_forward_kernel(%arg0: memref<2x4xf32, #tpu.memory_space<smem>>, %arg1: memref<4x128xf32, #tpu.memory_space<vmem>>, %arg2: memref<2x128xf32, #tpu.memory_space<vmem>>, %arg3: memref<8x128xf32, #tpu.memory_space<vmem>>, %arg4: memref<128x128xbf16, #tpu.memory_space<vmem>>, %arg5: memref<1x128xf32, #tpu.memory_space<vmem>>, %arg6: memref<16x128xf32, #tpu.memory_space<vmem>>) attributes {dimension_semantics = [], scalar_prefetch = 0 : i64, scratch_operands = 0 : i64, tpu.core_type = #tpu.core_type<tc>} {
    %c0 = arith.constant 0 : index
    %c0_0 = arith.constant 0 : index
    %0 = vector.load %arg1[%c0, %c0_0] : memref<4x128xf32, #tpu.memory_space<vmem>>, vector<4x128xf32>
    %c0_1 = arith.constant 0 : index
    %c0_2 = arith.constant 0 : index
    %1 = vector.load %arg3[%c0_1, %c0_2] : memref<8x128xf32, #tpu.memory_space<vmem>>, vector<8x128xf32>
    %c0_3 = arith.constant 0 : index
    %c0_4 = arith.constant 0 : index
    %2 = vector.load %arg4[%c0_3, %c0_4] : memref<128x128xbf16, #tpu.memory_space<vmem>>, vector<128x128xbf16>
    %c0_5 = arith.constant 0 : index
    %c0_6 = arith.constant 0 : index
    %3 = vector.load %arg5[%c0_5, %c0_6] : memref<1x128xf32, #tpu.memory_space<vmem>>, vector<1x128xf32>
    %c0_7 = arith.constant 0 : index
    %c0_8 = arith.constant 0 : index
    %4 = memref.load %arg0[%c0_7, %c0_8] : memref<2x4xf32, #tpu.memory_space<smem>>
    %5 = vector.extract_strided_slice %0 {offsets = [0, 0], sizes = [1, 128], strides = [1, 1]} : vector<4x128xf32> to vector<1x128xf32>
    %6 = vector.broadcast %4 : f32 to vector<1x128xf32>
    %7 = arith.mulf %6, %5 : vector<1x128xf32>
    %c0_9 = arith.constant 0 : index
    %c1 = arith.constant 1 : index
    %8 = memref.load %arg0[%c0_9, %c1] : memref<2x4xf32, #tpu.memory_space<smem>>
    %9 = vector.extract_strided_slice %0 {offsets = [1, 0], sizes = [1, 128], strides = [1, 1]} : vector<4x128xf32> to vector<1x128xf32>
    %10 = vector.broadcast %8 : f32 to vector<1x128xf32>
    %11 = arith.mulf %10, %9 : vector<1x128xf32>
    %12 = arith.addf %7, %11 : vector<1x128xf32>
    %c0_10 = arith.constant 0 : index
    %c2 = arith.constant 2 : index
    %13 = memref.load %arg0[%c0_10, %c2] : memref<2x4xf32, #tpu.memory_space<smem>>
    %14 = vector.extract_strided_slice %0 {offsets = [2, 0], sizes = [1, 128], strides = [1, 1]} : vector<4x128xf32> to vector<1x128xf32>
    %15 = vector.broadcast %13 : f32 to vector<1x128xf32>
    %16 = arith.mulf %15, %14 : vector<1x128xf32>
    %17 = arith.addf %12, %16 : vector<1x128xf32>
    %c0_11 = arith.constant 0 : index
    %c3 = arith.constant 3 : index
    %18 = memref.load %arg0[%c0_11, %c3] : memref<2x4xf32, #tpu.memory_space<smem>>
    %19 = vector.extract_strided_slice %0 {offsets = [3, 0], sizes = [1, 128], strides = [1, 1]} : vector<4x128xf32> to vector<1x128xf32>
    %20 = vector.broadcast %18 : f32 to vector<1x128xf32>
    %21 = arith.mulf %20, %19 : vector<1x128xf32>
    %22 = arith.addf %17, %21 : vector<1x128xf32>
    %c0_12 = arith.constant 0 : index
    %c0_13 = arith.constant 0 : index
    %23 = vector.load %arg2[%c0_12, %c0_13] : memref<2x128xf32, #tpu.memory_space<vmem>>, vector<1x128xf32>
    %24 = arith.addf %22, %23 : vector<1x128xf32>
    %cst = arith.constant 0.000000e+00 : f32
    %25 = vector.broadcast %cst : f32 to vector<1x128xf32>
    %26 = arith.maximumf %24, %25 : vector<1x128xf32>
    %27 = vector.broadcast %26 : vector<1x128xf32> to vector<8x128xf32>
    %28 = arith.addf %27, %1 : vector<8x128xf32>
    %cst_14 = arith.constant 0.000000e+00 : f32
    %29 = vector.broadcast %cst_14 : f32 to vector<8x128xf32>
    %30 = arith.maximumf %28, %29 : vector<8x128xf32>
    %31 = arith.truncf %30 : vector<8x128xf32> to vector<8x128xbf16>
    %cst_15 = arith.constant dense<0.000000e+00> : vector<8x128xf32>
    %32 = tpu.matmul %31, %2, %cst_15 {dimension_numbers = #tpu.dot_dimension_numbers<[1], [0], [0], [1], [0, 0, 1, 1], [], []>} : vector<8x128xbf16>, vector<128x128xbf16>, vector<8x128xf32> -> vector<8x128xf32>
    %33 = vector.broadcast %3 : vector<1x128xf32> to vector<8x128xf32>
    %34 = arith.addf %32, %33 : vector<8x128xf32>
    %c0_16 = arith.constant 0 : index
    %c0_17 = arith.constant 0 : index
    %35 = vector.load %arg6[%c0_16, %c0_17] : memref<16x128xf32, #tpu.memory_space<vmem>>, vector<8x128xf32>
    tpu.vector_store %arg6[%c0_16, %c0_17], %34 {strides = array<i32>} : memref<16x128xf32, #tpu.memory_space<vmem>>, vector<8x128xf32>,
    %c1_18 = arith.constant 1 : index
    %c0_19 = arith.constant 0 : index
    %36 = memref.load %arg0[%c1_18, %c0_19] : memref<2x4xf32, #tpu.memory_space<smem>>
    %37 = vector.extract_strided_slice %0 {offsets = [0, 0], sizes = [1, 128], strides = [1, 1]} : vector<4x128xf32> to vector<1x128xf32>
    %38 = vector.broadcast %36 : f32 to vector<1x128xf32>
    %39 = arith.mulf %38, %37 : vector<1x128xf32>
    %c1_20 = arith.constant 1 : index
    %c1_21 = arith.constant 1 : index
    %40 = memref.load %arg0[%c1_20, %c1_21] : memref<2x4xf32, #tpu.memory_space<smem>>
    %41 = vector.extract_strided_slice %0 {offsets = [1, 0], sizes = [1, 128], strides = [1, 1]} : vector<4x128xf32> to vector<1x128xf32>
    %42 = vector.broadcast %40 : f32 to vector<1x128xf32>
    %43 = arith.mulf %42, %41 : vector<1x128xf32>
    %44 = arith.addf %39, %43 : vector<1x128xf32>
    %c1_22 = arith.constant 1 : index
    %c2_23 = arith.constant 2 : index
    %45 = memref.load %arg0[%c1_22, %c2_23] : memref<2x4xf32, #tpu.memory_space<smem>>
    %46 = vector.extract_strided_slice %0 {offsets = [2, 0], sizes = [1, 128], strides = [1, 1]} : vector<4x128xf32> to vector<1x128xf32>
    %47 = vector.broadcast %45 : f32 to vector<1x128xf32>
    %48 = arith.mulf %47, %46 : vector<1x128xf32>
    %49 = arith.addf %44, %48 : vector<1x128xf32>
    %c1_24 = arith.constant 1 : index
    %c3_25 = arith.constant 3 : index
    %50 = memref.load %arg0[%c1_24, %c3_25] : memref<2x4xf32, #tpu.memory_space<smem>>
    %51 = vector.extract_strided_slice %0 {offsets = [3, 0], sizes = [1, 128], strides = [1, 1]} : vector<4x128xf32> to vector<1x128xf32>
    %52 = vector.broadcast %50 : f32 to vector<1x128xf32>
    %53 = arith.mulf %52, %51 : vector<1x128xf32>
    %54 = arith.addf %49, %53 : vector<1x128xf32>
    %c1_26 = arith.constant 1 : index
    %c0_27 = arith.constant 0 : index
    %55 = vector.load %arg2[%c1_26, %c0_27] : memref<2x128xf32, #tpu.memory_space<vmem>>, vector<1x128xf32>
    %56 = arith.addf %54, %55 : vector<1x128xf32>
    %cst_28 = arith.constant 0.000000e+00 : f32
    %57 = vector.broadcast %cst_28 : f32 to vector<1x128xf32>
    %58 = arith.maximumf %56, %57 : vector<1x128xf32>
    %59 = vector.broadcast %58 : vector<1x128xf32> to vector<8x128xf32>
    %60 = arith.addf %59, %1 : vector<8x128xf32>
    %cst_29 = arith.constant 0.000000e+00 : f32
    %61 = vector.broadcast %cst_29 : f32 to vector<8x128xf32>
    %62 = arith.maximumf %60, %61 : vector<8x128xf32>
    %63 = arith.truncf %62 : vector<8x128xf32> to vector<8x128xbf16>
    %cst_30 = arith.constant dense<0.000000e+00> : vector<8x128xf32>
    %64 = tpu.matmul %63, %2, %cst_30 {dimension_numbers = #tpu.dot_dimension_numbers<[1], [0], [0], [1], [0, 0, 1, 1], [], []>} : vector<8x128xbf16>, vector<128x128xbf16>, vector<8x128xf32> -> vector<8x128xf32>
    %65 = vector.broadcast %3 : vector<1x128xf32> to vector<8x128xf32>
    %66 = arith.addf %64, %65 : vector<8x128xf32>
    %c8 = arith.constant 8 : index
    %c0_31 = arith.constant 0 : index
    %67 = vector.load %arg6[%c8, %c0_31] : memref<16x128xf32, #tpu.memory_space<vmem>>, vector<8x128xf32>
    tpu.vector_store %arg6[%c8, %c0_31], %66 {strides = array<i32>} : memref<16x128xf32, #tpu.memory_space<vmem>>, vector<8x128xf32>,
    return
  }
}

</mosaic_0001>

<bundles_post_ra>
// kernel: top_down_baseline_forward.1
= control target key start
LH: loop header
LB: loop body
LE: loop exit
PB: predicated region body
PF: predicated region fallthrough
CT: control target
= control target key end

     0   :  { %11 = vsyncpa [#allocation3], 0  ;;  %s471_s0 = inlined_call_operand.vmem [shape: f32[2,4], index: 0, kind: input, shape index: {}]   ;;  %s472_s1 = inlined_call_operand.vmem [shape: f32[4,128], index: 1, kind: input, shape index: {}]   ;;  %s473_s2 = inlined_call_operand.vmem [shape: f32[2,128], index: 2, kind: input, shape index: {}]   ;;  %s474_s3 = inlined_call_operand.vmem [shape: f32[8,128], index: 3, kind: input, shape index: {}]   ;;  %s475_s4 = inlined_call_operand.vmem [shape: bf16[128,128], index: 4, kind: input, shape index: {}]   ;;  %s476_s5 = inlined_call_operand.vmem [shape: f32[1,128], index: 5, kind: input, shape index: {}]   ;;  %s477_s6 = inlined_call_operand.vmem [shape: f32[16,128], index: 6, kind: output, shape index: {}]  }
   0x1   :  { %s18_s23 = sshll.u32 %s471_s0, 4  ;;  %s19_s23 = int_to_ptr.vmem [resolvable:$true] %s18_s23 }
   0x2   :  { %s350_s24 = scalar_lea.vmem %s19_s23, 32  ;;  %p355_p1 = scmp.lt.s32.totalorder %s19_s23, %s19_s23 }
   0x3   :  { %p351_p0 = scmp.ne.s32.totalorder %s19_s23, %s350_s24  ;;  %p356_p2 = scmp.lt.s32.totalorder %s350_s24, %s350_s24 }
   0x5   :  { %p357_p3 = por %p356_p2, %p355_p1 }
   0x7   :  { %p358_p4 = pnand %p357_p3, %p351_p0 }
   0x9   :  { %361 = shalt.err (!%p358_p4)
}
   0xa   :  { %s364_s25 = smov [#allocation2]  }
   0xb   :  { %21 = dma.vmem_to_smem %s19_s23, 32, %s364_s25, [#allocation3]  }
   0xc   :  { %362 = dma.done.wait [#allocation3], 32  }
   0xd   :  { %363 = vsyncadd [#allocation3], 4294967264 }
   0xe   :  { %35 = sfence }
   0xf   :  { %v342_v0 = vld [vmem:[%s475_s4] sm:$0xff]   ;;  %v365_v1 = vmov 0.0   ;;  %v343_v2 = vld [vmem:[%s475_s4 + $0x8] sm:$0xff]   ;;  %vm366_vm0 = vmmov 0   ;;  %v344_v3 = vld [vmem:[%s475_s4 + $0x10] sm:$0xff]   ;;  %s56_s7 = sld [smem:[#allocation2]]  ;;  %v83_v11 = vlaneseq }
  0x10   :  { %299 = vmatprep.subr.bf16.mxu0 %v365_v1  ;;  %319 = vmatprep.subr.bf16.mxu1 %v365_v1  ;;  %s265_s8 = sld [smem:[#allocation2 + $0x1]]  ;;  %s266_s9 = sld [smem:[#allocation2 + $0x2]]  ;;  %v345_v4 = vld [vmem:[%s475_s4 + $0x18] sm:$0xff]   ;;  %v37_v5 = vld [vmem:[%s472_s1] sm:$0xf]  ;;  %v347_v20 = vld [vmem:[%s475_s4 + $0x28] sm:$0xff]  }
  0x11   :  { %300 = vmatpush3.bf16.msra.mxu0 %v342_v0  ;;  %320 = vmatpush3.bf16.msra.mxu1 %v342_v0  ;;  %s267_s12 = sld [smem:[#allocation2 + $0x3]]  ;;  %s277_s13 = sld [smem:[#allocation2 + $0x80]]  ;;  %v346_v6 = vld [vmem:[%s475_s4 + $0x20] sm:$0xff]   ;;  %v348_v31 = vld [vmem:[%s475_s4 + $0x30] sm:$0xff]   ;;  %v84_v33 = vshrl.u32 %v83_v11, 7  ;;  %v349_v40 = vld [vmem:[%s475_s4 + $0x38] sm:$0xff]  }
  0x12   :  { %301 = vmatprep.subr.bf16.mxu0 %v365_v1  ;;  %321 = vmatprep.subr.bf16.mxu1 %v365_v1  ;;  %s278_s14 = sld [smem:[#allocation2 + $0x81]]  ;;  %s279_s15 = sld [smem:[#allocation2 + $0x82]]  ;;  %v80_v36 = vld [vmem:[%s473_s2] sm:$0x1]  ;;  %v209_v39 = vld [vmem:[%s473_s2 + $0x1] sm:$0x1] }
  0x13   :  { %315 = vmatprep.mubr.msk.bf16.mxu0 %vm366_vm0, %v365_v1  ;;  %335 = vmatprep.mubr.msk.bf16.mxu1 %vm366_vm0, %v365_v1  ;;  %s427_s16 = sld [smem:[#allocation2 + $0x83]]  ;;  %v85_v42 = vsub.s32 0, %v84_v33  ;;  %v38_v46 = vld [vmem:[%s474_s3] sm:$0xff] }
  0x14   :  { %v268_v56 = vld [vmem:[%s476_s5] ss:$0 sm:$0xff] }
  0x15   :  { %302 = vmatpush3.bf16.msra.mxu0 %v343_v2  ;;  %322 = vmatpush3.bf16.msra.mxu1 %v343_v2  ;;  %v57_v7 = vstv %s56_s7 }
  0x16   :  { %303 = vmatprep.subr.bf16.mxu0 %v365_v1  ;;  %323 = vmatprep.subr.bf16.mxu1 %v365_v1  ;;  %v58_v8 = vmul.f32 %v57_v7, %v37_v5  ;;  %v60_v9 = vstv %s265_s8  ;;  %v67_v10 = vstv %s266_s9 }
  0x17   :  { %v61_v12 = vmul.f32 %v60_v9, %v37_v5  ;;  %v68_v13 = vmul.f32 %v67_v10, %v37_v5  ;;  %v74_v14 = vstv %s267_s12  ;;  %v186_v15 = vstv %s277_s13 }
  0x18   :  { %v75_v16 = vmul.f32 %v74_v14, %v37_v5  ;;  %v187_v17 = vmul.f32 %v186_v15, %v37_v5  ;;  %v189_v18 = vstv %s278_s14  ;;  %v196_v19 = vstv %s279_s15 }
  0x19   :  { %304 = vmatpush3.bf16.msra.mxu0 %v344_v3  ;;  %324 = vmatpush3.bf16.msra.mxu1 %v344_v3  ;;  %v63_v21 = vrot.slane %v61_v12, 1  ;;  %v70_v22 = vrot.slane %v68_v13, 2  ;;  %v190_v23 = vmul.f32 %v189_v18, %v37_v5  ;;  %v197_v24 = vmul.f32 %v196_v19, %v37_v5 }
  0x1a   :  { %305 = vmatprep.subr.bf16.mxu0 %v365_v1  ;;  %325 = vmatprep.subr.bf16.mxu1 %v365_v1  ;;  %v77_v25 = vrot.slane %v75_v16, 3  ;;  %v203_v26 = vstv %s427_s16 }
  0x1b   :  { %v65_v27 = vadd.f32 %v63_v21, %v58_v8  ;;  %v192_v28 = vrot.slane %v190_v23, 1  ;;  %v199_v29 = vrot.slane %v197_v24, 2  ;;  %v204_v30 = vmul.f32 %v203_v26, %v37_v5 }
  0x1d   :  { %306 = vmatpush3.bf16.msra.mxu0 %v345_v4  ;;  %326 = vmatpush3.bf16.msra.mxu1 %v345_v4  ;;  %v72_v32 = vadd.f32 %v70_v22, %v65_v27  ;;  %v194_v34 = vadd.f32 %v192_v28, %v187_v17  ;;  %v206_v35 = vrot.slane %v204_v30, 3 }
  0x1e   :  { %307 = vmatprep.subr.bf16.mxu0 %v365_v1  ;;  %327 = vmatprep.subr.bf16.mxu1 %v365_v1 }
  0x1f   :  { %v79_v37 = vadd.f32 %v77_v25, %v72_v32  ;;  %v201_v38 = vadd.f32 %v199_v29, %v194_v34 }
  0x21   :  { %308 = vmatpush3.bf16.msra.mxu0 %v346_v6  ;;  %328 = vmatpush3.bf16.msra.mxu1 %v346_v6  ;;  %v81_v41 = vadd.f32 %v80_v36, %v79_v37  ;;  %v208_v43 = vadd.f32 %v206_v35, %v201_v38 }
  0x22   :  { %309 = vmatprep.subr.bf16.mxu0 %v365_v1  ;;  %329 = vmatprep.subr.bf16.mxu1 %v365_v1 }
  0x23   :  { %v82_v44 = vmax.f32 %v81_v41, 0.0  ;;  %v210_v45 = vadd.f32 %v209_v39, %v208_v43 }
  0x25   :  { %310 = vmatpush3.bf16.msra.mxu0 %v347_v20  ;;  %330 = vmatpush3.bf16.msra.mxu1 %v347_v20  ;;  %v86_v47 = vrot.slane %v82_v44, %v85_v42  ;;  %v211_v48 = vmax.f32 %v210_v45, 0.0 }
  0x26   :  { %311 = vmatprep.subr.bf16.mxu0 %v365_v1  ;;  %331 = vmatprep.subr.bf16.mxu1 %v365_v1 }
  0x27   :  { %v87_v49 = vadd.f32 %v86_v47, %v38_v46  ;;  %v215_v50 = vrot.slane %v211_v48, %v85_v42 }
  0x29   :  { %312 = vmatpush3.bf16.msra.mxu0 %v348_v31  ;;  %332 = vmatpush3.bf16.msra.mxu1 %v348_v31  ;;  %v88_v51 = vmax.f32 %v87_v49, 0.0  ;;  %v216_v52 = vadd.f32 %v215_v50, %v38_v46 }
  0x2a   :  { %313 = vmatprep.subr.bf16.mxu0 %v365_v1  ;;  %333 = vmatprep.subr.bf16.mxu1 %v365_v1 }
  0x2b   :  { %v89_v53 = vpack.c.bf16 %v88_v51, %v88_v51  ;;  %v217_v54 = vmax.f32 %v216_v52, 0.0 }
  0x2d   :  { %314 = vmatpush3.bf16.msra.mxu0 %v349_v40  ;;  %334 = vmatpush3.bf16.msra.mxu1 %v349_v40  ;;  %v218_v55 = vpack.c.bf16 %v217_v54, %v217_v54 }
  0x30   :  { %316 = vmatmul.mubr.bf16.vlgmr.msra.gmra.mrb[0].mxu0 %v89_v53  ;;  %336 = vmatmul.mubr.bf16.vlgmr.msra.gmra.mrb[0].mxu1 %v218_v55 }
 0x103   :  { %v178_v57 = vpop.f32.mrb[0].mxu0  ;;  %v253_v60 = vpop.f32.mrb[0].mxu1 }
 0x104   :  { %v179_v58 = vadd.f32 %v268_v56, %v178_v57  ;;  %v317_v59 = vpop.f32.mrb[1].mxu0  ;;  %v254_v62 = vadd.f32 %v268_v56, %v253_v60  ;;  %v337_v63 = vpop.f32.mrb[1].mxu1 }
 0x105   :  { %v181_v61 = vpop.f32.mrb[2].mxu0  ;;  %v256_v1 = vpop.f32.mrb[2].mxu1 }
 0x106   :  { %184 = vst [vmem:[%s477_s6] sm:$0xff] %v179_v58  ;;  %v318_v0 = vpop.f32.mrb[3].mxu0  ;;  %259 = vst [vmem:[%s477_s6 + $0x8] sm:$0xff] %v254_v62  ;;  %v338_v2 = vpop.f32.mrb[3].mxu1 }
 0x107   :  { %264 = vsyncpa [#allocation3], 1 }

</bundles_post_ra>
